<compile_context>
chip_gen: v6e
topology: v6e:2x2x1
jax: 0.10.0
libtpu: 0.0.40
codegen_flags: <defaults>
</compile_context>

<pallas_src>
import math

import jax
import jax.numpy as jnp
from jax import lax
from jax.experimental import pallas as pl
from jax.experimental.pallas import tpu as pltpu


def _cdiv(a, b):
    return (a + b - 1) // b


def _round_up(x, m):
    return _cdiv(x, m) * m


def _balanced_tile(dim, align, max_tile):
    """Tile size (multiple of `align`) whose cdiv-split of `dim` has minimal
    overshoot, instead of clamping to max_tile and padding up to it."""
    padded = _round_up(max(dim, 1), align)
    if padded <= max_tile:
        return padded
    n_blocks = _cdiv(padded, max_tile)
    return _round_up(_cdiv(padded, n_blocks), align)


def _matmul_bias_kernel(x_ref, w_ref, b_ref, o_ref, acc_ref):
    # x_ref: (tm, tk)  w_ref: (tk, tn) [pre-transposed]  b_ref: (1, tn) f32
    # o_ref: (tm, tn)  acc_ref: (tm, tn) f32 scratch
    k = pl.program_id(2)

    @pl.when(k == 0)
    def _():
        # Fold the bias into the accumulator init (saves an epilogue add).
        acc_ref[...] = jnp.broadcast_to(b_ref[...].astype(jnp.float32),
                                        acc_ref.shape)

    acc_ref[...] += jnp.dot(x_ref[...], w_ref[...],
                            preferred_element_type=jnp.float32)

    @pl.when(k == pl.num_programs(2) - 1)
    def _():
        o_ref[...] = acc_ref[...].astype(o_ref.dtype)


def _matmul_kernel(x_ref, w_ref, o_ref, acc_ref):
    k = pl.program_id(2)

    @pl.when(k == 0)
    def _():
        acc_ref[...] = jnp.zeros_like(acc_ref)

    acc_ref[...] += jnp.dot(x_ref[...], w_ref[...],
                            preferred_element_type=jnp.float32)

    @pl.when(k == pl.num_programs(2) - 1)
    def _():
        o_ref[...] = acc_ref[...].astype(o_ref.dtype)


def linear_norm_forward(x, weight, bias=None, *, force_pallas=False,
                        compute_dtype=jnp.bfloat16,
                        tm_max=512, tn_max=1024, tk_max=512):
    """y = x @ weight.T + bias, matching torch.nn.Linear semantics.

    x:      [..., in_dim]
    weight: [out_dim, in_dim]   (PyTorch convention)
    bias:   [out_dim] or None
    """
    K = x.shape[-1]
    N, K_w = weight.shape
    assert K_w == K, "weight must be [out_dim, in_dim]"
    lead = x.shape[:-1]
    M = int(math.prod(lead)) if lead else 1
    out_dtype = x.dtype

    # Tiny problems: launch + per-grid-step overhead dwarfs the matmul.
    if not force_pallas and (2 * M * N * K) < (1 << 22):
        y = jnp.dot(x, weight.T, preferred_element_type=jnp.float32)
        if bias is not None:
            y = y + bias
        return y.astype(out_dtype)

    if compute_dtype is None:
        compute_dtype = x.dtype
    x2d = x.reshape(M, K).astype(compute_dtype)
    # One-time HBM-side transpose of the parameter into [K, N]: the kernel then
    # runs a plain (tm,tk)x(tk,tn) contraction with no per-tile transpose.
    # TODO(synk): in a real model, cache wT across calls (weight is a parameter).
    wT = weight.T.astype(compute_dtype)

    # Sublane packing: bf16 needs (16,128) tiles, f32 (8,128); lanes need 128.
    m_align = 16 if jnp.dtype(compute_dtype).itemsize < 4 else 8
    tm = _balanced_tile(M, m_align, tm_max)
    tn = _balanced_tile(N, 128, tn_max)
    tk = _balanced_tile(K, 128, tk_max)

    # Keep >= 2 parallel grid blocks when possible so both v7x TensorCores work.
    if _cdiv(M, tm) * _cdiv(N, tn) < 2:
        if tn > 128:
            tn = _round_up(_cdiv(tn, 2), 128)
        elif tm > m_align:
            tm = _round_up(_cdiv(tm, 2), m_align)

    # Only K genuinely needs zero padding (it feeds the accumulation). Partial
    # M/N edge blocks are masked on writeback and never leave the (M, N) output.
    Kp = _round_up(K, tk)
    if Kp != K:
        x2d = jnp.pad(x2d, ((0, 0), (0, Kp - K)))
        wT = jnp.pad(wT, ((0, Kp - K), (0, 0)))

    grid_m = _cdiv(M, tm)
    grid_n = _cdiv(N, tn)
    grid_k = Kp // tk
    grid = (grid_m, grid_n, grid_k)

    in_itemsize = jnp.dtype(compute_dtype).itemsize
    cost = pl.CostEstimate(
        flops=2 * (grid_m * tm) * (grid_n * tn) * Kp,
        transcendentals=0,
        bytes_accessed=(
            M * Kp * in_itemsize * grid_n        # x re-read once per N tile
            + Kp * N * in_itemsize * grid_m      # w re-read once per M tile
            + M * N * jnp.dtype(out_dtype).itemsize
            + (N * 4 * grid_m if bias is not None else 0)
        ),
    )

    x_spec = pl.BlockSpec((tm, tk), lambda i, j, k: (i, k))
    w_spec = pl.BlockSpec((tk, tn), lambda i, j, k: (k, j))
    out_spec = pl.BlockSpec((tm, tn), lambda i, j, k: (i, j))

    if bias is not None:
        kernel = _matmul_bias_kernel
        in_specs = [x_spec, w_spec,
                    pl.BlockSpec((1, tn), lambda i, j, k: (0, j))]
        operands = (x2d, wT, bias.astype(jnp.float32).reshape(1, N))
    else:
        kernel = _matmul_kernel
        in_specs = [x_spec, w_spec]
        operands = (x2d, wT)

    out = pl.pallas_call(
        kernel,
        out_shape=jax.ShapeDtypeStruct((M, N), out_dtype),
        grid_spec=pltpu.PrefetchScalarGridSpec(
            num_scalar_prefetch=0,
            grid=grid,
            in_specs=in_specs,
            out_specs=out_spec,
            scratch_shapes=[pltpu.VMEM((tm, tn), jnp.float32)],
        ),
        compiler_params=pltpu.CompilerParams(
            dimension_semantics=("parallel", "parallel", "arbitrary"),
            vmem_limit_bytes=32 * 1024 * 1024,
        ),
        cost_estimate=cost,
    )(*operands)

    return out.reshape(*lead, N)


def init_linear_norm_params(key, in_dim, out_dim, w_init_gain="linear",
                            with_bias=True):
    """weight ~ xavier_uniform(gain=calculate_gain(w_init_gain)),
    bias ~ U(-1/sqrt(in_dim), 1/sqrt(in_dim)) (nn.Linear default)."""
    gain = 1.0  # calculate_gain('linear') == 1.0
    k_w, k_b = jax.random.split(key)
    limit = gain * math.sqrt(6.0 / (in_dim + out_dim))
    weight = jax.random.uniform(
        k_w, (out_dim, in_dim), minval=-limit, maxval=limit, dtype=jnp.float32)
    if not with_bias:
        return weight, None
    b_bound = 1.0 / math.sqrt(in_dim)
    bias = jax.random.uniform(
        k_b, (out_dim,), minval=-b_bound, maxval=b_bound, dtype=jnp.float32)
    return weight, bias


def _bf16_reference(x, weight, bias):
    y = jnp.dot(x.astype(jnp.bfloat16), weight.T.astype(jnp.bfloat16),
                preferred_element_type=jnp.float32)
    if bias is not None:
        y = y + bias
    return y.astype(x.dtype)


def _f32_reference(x, weight, bias):
    y = jnp.dot(x, weight.T, precision=lax.Precision.HIGHEST)
    if bias is not None:
        y = y + bias
    return y


if __name__ == "__main__":
    key = jax.random.PRNGKey(0)
    k1, k2, k3, k4, k5, k6 = jax.random.split(key, 6)

    # Case 1: unaligned dims (K padding, partial M/N edge blocks, bias).
    batch, seq, in_dim, out_dim = 2, 24, 96, 80
    x = jax.random.normal(k1, (batch, seq, in_dim), dtype=jnp.float32)
    weight, bias = init_linear_norm_params(k2, in_dim, out_dim)
    y = jax.block_until_ready(linear_norm_forward(x, weight, bias, force_pallas=True))
    assert y.shape == (batch, seq, out_dim)
    assert jnp.allclose(y, _bf16_reference(x, weight, bias), atol=1e-2, rtol=1e-2)
    assert jnp.allclose(y, _f32_reference(x, weight, bias), atol=1e-1, rtol=5e-2)

    # Case 2: K > tk (balanced multi-step K reduction) and a split N grid.
    batch2, seq2, in_dim2, out_dim2 = 2, 40, 640, 256
    x2 = jax.random.normal(k3, (batch2, seq2, in_dim2), dtype=jnp.float32)
    weight2, bias2 = init_linear_norm_params(k4, in_dim2, out_dim2)
    y2 = jax.block_until_ready(
        linear_norm_forward(x2, weight2, bias2, force_pallas=True))
    assert y2.shape == (batch2, seq2, out_dim2)
    assert jnp.allclose(y2, _bf16_reference(x2, weight2, bias2), atol=1e-2, rtol=1e-2)
    assert jnp.allclose(y2, _f32_reference(x2, weight2, bias2), atol=1e-1, rtol=5e-2)

    # Case 3: bias=False path (bias-less kernel variant).
    batch3, seq3, in_dim3, out_dim3 = 2, 8, 32, 64
    x3 = jax.random.normal(k5, (batch3, seq3, in_dim3), dtype=jnp.float32)
    weight3, _ = init_linear_norm_params(k6, in_dim3, out_dim3, with_bias=False)
    y3 = jax.block_until_ready(
        linear_norm_forward(x3, weight3, None, force_pallas=True))
    assert y3.shape == (batch3, seq3, out_dim3)
    assert jnp.allclose(y3, _bf16_reference(x3, weight3, None), atol=1e-2, rtol=1e-2)

    print("KERNEL_OK")
</pallas_src>

<mosaic_0001>
module attributes {stable_mosaic.version = 11 : i64} {
  func.func @_matmul_bias_kernel(%arg0: i32, %arg1: i32, %arg2: i32, %arg3: memref<32x128xbf16, #tpu.memory_space<vmem>>, %arg4: memref<128x128xbf16, #tpu.memory_space<vmem>>, %arg5: memref<1x128xf32, #tpu.memory_space<vmem>>, %arg6: memref<32x128xf32, #tpu.memory_space<vmem>>, %arg7: memref<32x128xf32, #tpu.memory_space<vmem>>) attributes {dimension_semantics = [#tpu.dimension_semantics<parallel>, #tpu.dimension_semantics<parallel>, #tpu.dimension_semantics<arbitrary>], iteration_bounds = array<i64: 2, 1, 1>, scalar_prefetch = 0 : i64, scratch_operands = 1 : i64, tpu.core_type = #tpu.core_type<tc>, window_params = [{transform_indices = @transform_0, window_bounds = array<i64: 32, 128>}, {transform_indices = @transform_1, window_bounds = array<i64: 128, 128>}, {transform_indices = @transform_2, window_bounds = array<i64: 1, 128>}, {transform_indices = @transform_3, window_bounds = array<i64: 32, 128>}]} {
    %c0_i32 = arith.constant 0 : i32
    %0 = arith.cmpi eq, %arg2, %c0_i32 : i32
    %1 = arith.extui %0 : i1 to i32
    %c0_i32_0 = arith.constant 0 : i32
    %2 = arith.cmpi ne, %1, %c0_i32_0 : i32
    scf.if %2 {
      %c0_10 = arith.constant 0 : index
      %c0_11 = arith.constant 0 : index
      %12 = vector.load %arg5[%c0_10, %c0_11] : memref<1x128xf32, #tpu.memory_space<vmem>>, vector<1x128xf32>
      %13 = vector.shape_cast %12 : vector<1x128xf32> to vector<1x128xf32>
      %14 = vector.broadcast %13 : vector<1x128xf32> to vector<32x128xf32>
      %c0_12 = arith.constant 0 : index
      %c0_13 = arith.constant 0 : index
      %15 = vector.load %arg7[%c0_12, %c0_13] : memref<32x128xf32, #tpu.memory_space<vmem>>, vector<32x128xf32>
      tpu.vector_store %arg7[%c0_12, %c0_13], %14 {strides = array<i32>} : memref<32x128xf32, #tpu.memory_space<vmem>>, vector<32x128xf32>,
    } else {
    }
    %c0 = arith.constant 0 : index
    %c0_1 = arith.constant 0 : index
    %3 = vector.load %arg7[%c0, %c0_1] : memref<32x128xf32, #tpu.memory_space<vmem>>, vector<32x128xf32>
    %c0_2 = arith.constant 0 : index
    %c0_3 = arith.constant 0 : index
    %4 = vector.load %arg3[%c0_2, %c0_3] : memref<32x128xbf16, #tpu.memory_space<vmem>>, vector<32x128xbf16>
    %c0_4 = arith.constant 0 : index
    %c0_5 = arith.constant 0 : index
    %5 = vector.load %arg4[%c0_4, %c0_5] : memref<128x128xbf16, #tpu.memory_space<vmem>>, vector<128x128xbf16>
    %cst = arith.constant dense<0.000000e+00> : vector<32x128xf32>
    %6 = tpu.matmul %4, %5, %cst {dimension_numbers = #tpu.dot_dimension_numbers<[1], [0], [0], [1], [0, 0, 1, 1], [], []>} : vector<32x128xbf16>, vector<128x128xbf16>, vector<32x128xf32> -> vector<32x128xf32>
    %7 = arith.addf %3, %6 : vector<32x128xf32>
    %c0_6 = arith.constant 0 : index
    %c0_7 = arith.constant 0 : index
    %8 = vector.load %arg7[%c0_6, %c0_7] : memref<32x128xf32, #tpu.memory_space<vmem>>, vector<32x128xf32>
    tpu.vector_store %arg7[%c0_6, %c0_7], %7 {strides = array<i32>} : memref<32x128xf32, #tpu.memory_space<vmem>>, vector<32x128xf32>,
    %c0_i32_8 = arith.constant 0 : i32
    %9 = arith.cmpi eq, %arg2, %c0_i32_8 : i32
    %10 = arith.extui %9 : i1 to i32
    %c0_i32_9 = arith.constant 0 : i32
    %11 = arith.cmpi ne, %10, %c0_i32_9 : i32
    scf.if %11 {
      %c0_10 = arith.constant 0 : index
      %c0_11 = arith.constant 0 : index
      %12 = vector.load %arg7[%c0_10, %c0_11] : memref<32x128xf32, #tpu.memory_space<vmem>>, vector<32x128xf32>
      %c0_12 = arith.constant 0 : index
      %c0_13 = arith.constant 0 : index
      %13 = vector.load %arg6[%c0_12, %c0_13] : memref<32x128xf32, #tpu.memory_space<vmem>>, vector<32x128xf32>
      tpu.vector_store %arg6[%c0_12, %c0_13], %12 {strides = array<i32>} : memref<32x128xf32, #tpu.memory_space<vmem>>, vector<32x128xf32>,
    } else {
    }
    return
  }
  func.func @transform_0(%arg0: i32, %arg1: i32, %arg2: i32) -> (i32, i32) {
    %c0_i32 = arith.constant 0 : i32
    return %arg0, %arg2 : i32, i32
  }
  func.func @transform_1(%arg0: i32, %arg1: i32, %arg2: i32) -> (i32, i32) {
    %c0_i32 = arith.constant 0 : i32
    return %arg2, %arg1 : i32, i32
  }
  func.func @transform_2(%arg0: i32, %arg1: i32, %arg2: i32) -> (i32, i32) {
    %c0_i32 = arith.constant 0 : i32
    %c0_i32_0 = arith.constant 0 : i32
    return %c0_i32, %arg1 : i32, i32
  }
  func.func @transform_3(%arg0: i32, %arg1: i32, %arg2: i32) -> (i32, i32) {
    %c0_i32 = arith.constant 0 : i32
    return %arg0, %arg1 : i32, i32
  }
}

</mosaic_0001>

<bundles_post_ra>
// kernel: tpu_custom_call.1
= control target key start
LH: loop header
LB: loop body
LE: loop exit
PB: predicated region body
PF: predicated region fallthrough
CT: control target
= control target key end

     0   :  { %8 = vsyncpa [#allocation4], 0  ;;  %s955_s0 = inlined_call_operand.vmem [shape: bf16[48,128], index: 0, kind: input, shape index: {}]   ;;  %s956_s1 = inlined_call_operand.vmem [shape: bf16[128,80], index: 1, kind: input, shape index: {}]   ;;  %s957_s2 = inlined_call_operand.vmem [shape: f32[1,80], index: 2, kind: input, shape index: {}]   ;;  %s958_s3 = inlined_call_operand.hbm [shape: f32[48,80], index: 3, kind: output, shape index: {}]  }
   0x1   :  { %10 = vsyncpa [#allocation4 + $0x1], 0  ;;  %s800_s12 = smov 0   ;;  %s802_s13 = smov 0  }
   0x2   :  { %s804_s14 = smov 0   ;;  %s806_s15 = smov 0  }
   0x3   :  { %s808_s16 = smov 0   ;;  %s810_s17 = smov 0  }
   0x4 LB: > { %s572_s18 = sadd.s32 4294967295, %s775_s17   ;;  %s573_s19 = sadd.s32 4294967294, %s775_s17   ;;  %s775_s17 = sphi %s810_s17, %s16_s17   ;;  %s771_s16 = sphi %s808_s16, %s965_s16   ;;  %s767_s15 = sphi %s806_s15, %s964_s15   ;;  %s763_s14 = sphi %s804_s14, %s963_s14   ;;  %s759_s13 = sphi %s802_s13, %s962_s13   ;;  %s755_s12 = sphi %s800_s12, %s961_s12  }
   0x5   : > { %s35_s20 = sadd.s32 1, %s771_s16  ;;  %s126_s21 = sadd.s32 1, %s763_s14 }
   0x6   : > { %p37_p0 = scmp.ge.s32.totalorder %s35_s20, 2  ;;  %p136_p1 = scmp.ne.s32.totalorder %s763_s14, %s759_s13 }
   0x7   : > { %p137_p2 = scmp.eq.s32.totalorder %s572_s18, 1  ;;  %p142_p3 = scmp.ne.s32.totalorder %s759_s13, %s755_s12 }
   0x8   : > { %s967_s20 = smov (%p37_p0, %s35_s20), 0  ;;  %p143_p5 = scmp.eq.s32.totalorder %s573_s19, 1 }
   0x9   : > { %p840_p4 = por %p137_p2, %p136_p1  ;;  %s121_s23 = ssub.s32 %s771_s16, %s967_s20 }
   0xa   : > { %p578_p6 = scmp.ge.s32.totalorder %s775_s17, 1  ;;  %p124_p7 = scmp.eq.s32.totalorder %s121_s23, 0 }
   0xb   : > { %p847_p8 = por %p143_p5, %p142_p3  ;;  %p199_p9 = scmp.lt.s32.totalorder %s775_s17, 3 }
   0xc   : > { %s853_s25 = scalar_select %p124_p7, %s763_s14, %s126_s21  }
   0xd   : > { %p200_p10 = pnand %p578_p6, %p199_p9 }
   0xe   : > { %s859_s28 = sshll.u32 (!%p200_p10), %s767_s15, 2  ;;  %s238_s5 = sand.u32 (!%p200_p10), 1, %s759_s13  }
   0xf   : > { %203 = sbr.rel (%p200_p10) target bundleno = 282 (0x11a), region = 32  ;;  %p246_p11 = scmp.lt.s32.totalorder (!%p200_p10), %s859_s28, 5 }
  0x10   : > { %s579_s6 = sshll.u32 (!%p200_p10), %s238_s5, 5 }
  0x11   : > { %s240_s9 = scalar_lea.vmem (!%p200_p10), [#allocation3], %s579_s6 }
  0x14   : > { %v689_v0 = vld [vmem:[%s956_s1 + $0x38] sm:$0xff]   ;;  %v690_v1 = vld [vmem:[%s956_s1 + $0x30] sm:$0xff]   ;;  %s247_s4 = scalar_select %p246_p11, %s859_s28, 5  ;;  %v691_v2 = vld [vmem:[%s956_s1 + $0x28] sm:$0xff]  }
  0x15   : > { %613 = vmatprep.subr.bf16.mxu0 %v689_v0  ;;  %v692_v3 = vld [vmem:[%s956_s1 + $0x20] sm:$0xff]   ;;  %v693_v5 = vld [vmem:[%s956_s1 + $0x18] sm:$0xff]   ;;  %v694_v6 = vld [vmem:[%s956_s1 + $0x10] sm:$0xff]   ;;  %s452_s11 = ssub.s32 (%p840_p4), 6, %s859_s28 }
  0x16   : > { %614 = vmatpush3.bf16.msra.mxu0 %v689_v0  ;;  %s581_s7 = sshll.u32 %s247_s4, 2  ;;  %v695_v7 = vld [vmem:[%s956_s1 + $0x8] sm:$0xff]   ;;  %v696_v8 = vld [vmem:[%s956_s1] sm:$0xff]   ;;  %p453_p12 = scmp.lt.s32.totalorder (%p840_p4), %s452_s11, 4 }
  0x17   : > { %615 = vmatprep.subr.bf16.mxu0 %v690_v1  ;;  %s252_s10 = scalar_lea.vmem %s955_s0, %s581_s7  ;;  %v582_v10 = vld [vmem:[%s957_s2] ss:$0 sm:$0xff] }
  0x18   : > { %v697_v4 = vld [vmem:[%s252_s10] sm:$0xff]   ;;  %v698_v9 = vld [vmem:[%s252_s10 + $0x8] sm:$0xff]   ;;  %s891_s10 = scalar_lea.sflag [#allocation4], %s238_s5 }
  0x19   : > { %629 = vmatprep.mubr.bf16.mxu0 %v697_v4 }
  0x1a   : > { %616 = vmatpush3.bf16.msra.mxu0 %v690_v1 }
  0x1b   : > { %617 = vmatprep.subr.bf16.mxu0 %v691_v2 }
  0x1e   : > { %618 = vmatpush3.bf16.msra.mxu0 %v691_v2 }
  0x1f   : > { %619 = vmatprep.subr.bf16.mxu0 %v692_v3 }
  0x22   : > { %620 = vmatpush3.bf16.msra.mxu0 %v692_v3 }
  0x23   : > { %621 = vmatprep.subr.bf16.mxu0 %v693_v5 }
  0x26   : > { %622 = vmatpush3.bf16.msra.mxu0 %v693_v5 }
  0x27   : > { %623 = vmatprep.subr.bf16.mxu0 %v694_v6 }
  0x2a   : > { %624 = vmatpush3.bf16.msra.mxu0 %v694_v6 }
  0x2b   : > { %625 = vmatprep.subr.bf16.mxu0 %v695_v7 }
  0x2e   : > { %626 = vmatpush3.bf16.msra.mxu0 %v695_v7 }
  0x2f   : > { %627 = vmatprep.subr.bf16.mxu0 %v696_v8 }
  0x32   : > { %628 = vmatpush3.bf16.msra.mxu0 %v696_v8 }
  0x35   : > { %630 = vmatmul.mubr.bf16.vlgmr.msra.gmra.mxu0 %v698_v9 }
  0xf5   : > { %v631_v11 = vpop.f32.mrf.mxu0 }
  0xf6   : > { %v426_v12 = vadd.f32 %v631_v11, %v582_v10 }
  0xf7   : > { %v409_v13 = vpop.f32.mrf.mxu0 }
  0xf8   : > { %441 = vst [vmem:[%s240_s9 + $0x10] sm:$0xff] %v426_v12  ;;  %v424_v14 = vadd.f32 %v582_v10, %v409_v13 }
  0xf9   : > { %v632_v15 = vpop.f32.mrf.mxu0 }
  0xfa   : > { %439 = vst [vmem:[%s240_s9] sm:$0xff] %v424_v14  ;;  %v427_v16 = vadd.f32 %v632_v15, %v582_v10  ;;  %450 = sbr.rel (!%p840_p4) target bundleno = 282 (0x11a), region = 44 }
  0xfb   : > { %v412_v17 = vpop.f32.mrf.mxu0 }
  0xfc   : > { %442 = vst [vmem:[%s240_s9 + $0x18] sm:$0xff] %v427_v16  ;;  %v425_v18 = vadd.f32 %v582_v10, %v412_v17 }
  0xfe   : > { %440 = vst [vmem:[%s240_s9 + $0x8] sm:$0xff] %v425_v18 }
  0xff   : > { %s969_s11 = smov (!%p453_p12, %s452_s11), 4 }
 0x100   : > { %s896_s18 = sshll.u32 %s969_s11, 7 }
 0x101   : > { %s457_s19 = ssub.s32 512, %s896_s18 }
 0x102   : > { %458 = vsyncadd %s891_s10, %s457_s19  ;;  %p596_p13 = scmp.ne.s32.totalorder %s896_s18, 0  ;;  %s602_s21 = sshll.u32 %s767_s15, 9 }
 0x103   : > { %s905_s22 = scalar_lea.hbm %s958_s3, %s602_s21  ;;  %s464_s27 = sshll.u32 %s240_s9, 4  ;;  %s907_s27 = int_to_ptr.vmem [resolvable:$true] %s464_s27 }
 0x104   : > { %s699_s28 = scalar_lea.vmem %s907_s27, %s896_s18  ;;  %s777_s29 = smov [#allocation3]  }
 0x105   : > { %p700_p0 = scmp.ne.s32.totalorder %s907_s27, %s699_s28  ;;  %s703_s30 = sshll.u32 %s777_s29, 4  ;;  %s704_s30 = int_to_ptr.vmem [resolvable:$false] %s703_s30 }
 0x106   : > { %s705_s15 = scalar_lea.vmem %s704_s30, 1024  ;;  %p706_p3 = scmp.lt.s32.totalorder %s907_s27, %s704_s30 }
 0x107   : > { %p701_p1 = pnand %p700_p0, %p596_p13  ;;  %p707_p4 = scmp.lt.s32.totalorder %s705_s15, %s699_s28 }
 0x109   : > { %p702_p2 = pneg %p701_p1  ;;  %p708_p5 = por %p707_p4, %p706_p3 }
 0x10b   : > { %p709_p6 = pnand %p708_p5, %p702_p2 }
 0x10d   : > { %712 = shalt.err (!%p709_p6)
}
 0x10e   : > { %s713_s4 = scalar_lea.hbm %s905_s22, %s896_s18  ;;  %s717_s7 = scalar_lea.hbm %s958_s3, 768 }
 0x10f   : > { %p714_p7 = scmp.ne.s32.totalorder %s905_s22, %s713_s4  ;;  %p718_p11 = scmp.lt.s32.totalorder %s905_s22, %s958_s3 }
 0x110   : > { %p719_p12 = scmp.lt.s32.totalorder %s717_s7, %s713_s4 }
 0x111   : > { %p715_p9 = pnand %p714_p7, %p596_p13 }
 0x112   : > { %p720_p0 = por %p719_p12, %p718_p11 }
 0x113   : > { %p716_p10 = pneg %p715_p9 }
 0x115   : > { %p721_p1 = pnand %p720_p0, %p716_p10 }
 0x117   : > { %724 = shalt.err (!%p721_p1)
}
 0x118   : > { %s778_s11 = smov 128   ;;  %s779_s19 = smov 8  }
 0x119   : > { %470 = dma.vmem_to_hbm [thread:$0]  (%p596_p13), %s907_s27, %s896_s18, %s905_s22, %s891_s10, %s778_s11, %s778_s11, %s779_s19  }
 0x11a PF: > { %p638_p2 = scmp.ge.s32.totalorder %s775_s17, 2  ;;  %s479_s21 = sand.u32 1, %s755_s12  }
 0x11b   : > { %s480_s23 = scalar_lea.sflag [#allocation4], %s479_s21 }
 0x11c   : > { %p635_p3 = pnand %p638_p2, %p847_p8 }
 0x11e   : > { %p636_p4 = pneg %p635_p3 }
 0x120   : > { %750 = dma.done.wait (%p636_p4), %s480_s23, 512  }
 0x121   : > { %752 = vsyncadd (%p636_p4), %s480_s23, 4294966784  ;;  %s16_s17 = sadd.s32 1, %s775_s17   ;;  %s961_s12 = smov %s759_s13 }
 0x122   : > { %p13_p5 = scmp.ge.s32.totalorder %s16_s17, 4   ;;  %s962_s13 = smov %s763_s14 }
 0x123   : > { %s963_s14 = smov %s853_s25  ;;  %s964_s15 = smov %s771_s16 }
 0x124   : > { %s965_s16 = smov %s967_s20  ;;  %15 = sbr.rel (!%p13_p5) target bundleno = 4 (0x4), region = 81 }
 0x129   :  { %485 = vsyncpa [#allocation4], 1 }
 0x12a   :  { %487 = vsyncpa [#allocation4 + $0x1], 1 }

</bundles_post_ra>
